<compile_context>
chip_gen: v6e
topology: v6e:2x2x1
jax: 0.10.0
libtpu: 0.0.40
codegen_flags: <defaults>
</compile_context>

<pallas_src>
import functools

import jax
import jax.numpy as jnp
from jax.experimental import pallas as pl
from jax.experimental.pallas import tpu as pltpu


# ----------------------------- fused Pallas kernel ------------------------- #

def _encoder_fused_kernel(*refs, n_conv, z_dim):
    """refs = [x, (M_l, c_l) * n_conv, wh, bh, wa1, ba1, wa2, ba2, eps,
               items_out, z_out]."""
    it = iter(refs)
    x_ref = next(it)
    conv = [(next(it), next(it)) for _ in range(n_conv)]
    wh_ref, bh_ref = next(it), next(it)
    wa1_ref, ba1_ref = next(it), next(it)
    wa2_ref, ba2_ref = next(it), next(it)
    eps_ref = next(it)
    items_ref = next(it)
    z_ref = next(it)

    # Conv stack in dense-matmul form; activations stay in vregs/VMEM.
    h = x_ref[...]
    for m_ref, c_ref in conv:
        h = jnp.dot(h, m_ref[...], preferred_element_type=jnp.float32)
        h = jnp.maximum(h + c_ref[...], 0.0)

    # Fused mu/logvar heads: one (F, 2Z) matmul, static split.
    heads = jnp.dot(h, wh_ref[...], preferred_element_type=jnp.float32) + bh_ref[...]
    mu = heads[:, :z_dim]
    logvar = heads[:, z_dim:]
    std = jnp.exp(0.5 * logvar)                       # f32 exp -> EUP slot
    z = mu + std * eps_ref[...]

    # ActionNetRL: Linear -> ReLU -> Linear.
    hid = jnp.dot(z, wa1_ref[...], preferred_element_type=jnp.float32)
    hid = jnp.maximum(hid + ba1_ref[...], 0.0)
    items = jnp.dot(hid, wa2_ref[...], preferred_element_type=jnp.float32) + ba2_ref[...]

    items_ref[...] = items.astype(items_ref.dtype)
    z_ref[...] = z.astype(z_ref.dtype)


# ------------------- init-time conv -> dense-matrix lowering --------------- #

def _conv_to_dense(w_oihw, b, in_chw, stride=2, pad=1):
    """Return (M, c, out_chw) so that flatten_CHW(conv(x)) == flat_CHW(x)@M + c.

    Built by pushing the identity basis through the conv (init-time only)."""
    cin, hin, win = in_chw
    n_in = cin * hin * win
    basis = jnp.eye(n_in, dtype=jnp.float32).reshape(n_in, cin, hin, win)
    out = jax.lax.conv_general_dilated(
        basis, w_oihw,
        window_strides=(stride, stride),
        padding=((pad, pad), (pad, pad)),
        dimension_numbers=('NCHW', 'OIHW', 'NCHW'))
    _, cout, oh, ow = out.shape
    m = out.reshape(n_in, cout * oh * ow)
    c = jnp.repeat(b, oh * ow).reshape(1, cout * oh * ow)   # channel-major bias
    return m, c, (cout, oh, ow)


# ------------------------------------ Encoder ------------------------------ #

class Encoder:
    def __init__(self, config, key):
        self.config = config
        self.conv_dim = config['dimension']
        self.n_enc_lay = config['n_enc_lay']
        self.latent_dim = config['latent_dim']
        self.item_rep = config['item_rep']
        self.rep_copies = config['rep_copies']
        assert self.conv_dim == 2, "only 2-D convolutions implemented"

        cin, img_h, img_w = config['img_shape']
        # exactly the reference formula
        self.fcs_infeatures = int(
            img_w ** self.conv_dim
            / 2 ** (self.n_enc_lay * (self.conv_dim - 1) + 1))

        # channel schedule so that flatten(conv output) == fcs_infeatures
        spatial = (img_w // 2 ** self.n_enc_lay) ** 2
        c_final = self.fcs_infeatures // spatial
        chans, c = [], cin
        for i in range(self.n_enc_lay):
            c_out = c_final if i == self.n_enc_lay - 1 else min(c * 2, c_final)
            chans.append((c, c_out))
            c = c_out

        keys = jax.random.split(key, 2 * self.n_enc_lay + 6)
        ki = iter(range(len(keys)))

        # Conv layers -> exact dense-matmul form (hoisted to init).
        in_chw = (cin, img_h, img_w)
        self.conv_mats = []
        for (ci, co) in chans:
            w = 0.1 * jax.random.normal(keys[next(ki)], (co, ci, 3, 3), jnp.float32)
            b = 0.01 * jax.random.normal(keys[next(ki)], (co,), jnp.float32)
            m, cvec, in_chw = _conv_to_dense(w, b, in_chw)
            self.conv_mats.append((m, cvec))
        n_feat = in_chw[0] * in_chw[1] * in_chw[2]
        assert n_feat == self.fcs_infeatures, (n_feat, self.fcs_infeatures)

        F, Z = self.fcs_infeatures, self.latent_dim
        H = F                                    # hidden width of action MLP
        O = self.item_rep * self.rep_copies
        self.z_dim, self.out_dim = Z, O

        # fused mu/logvar head: (F, 2Z) weight, (1, 2Z) bias (pre-reshaped)
        self.wh = 0.1 * jax.random.normal(keys[next(ki)], (F, 2 * Z), jnp.float32)
        self.bh = (0.01 * jax.random.normal(keys[next(ki)], (2 * Z,), jnp.float32)
                   ).reshape(1, 2 * Z)
        self.wa1 = 0.1 * jax.random.normal(keys[next(ki)], (Z, H), jnp.float32)
        self.ba1 = (0.01 * jax.random.normal(keys[next(ki)], (H,), jnp.float32)
                    ).reshape(1, H)
        self.wa2 = 0.1 * jax.random.normal(keys[next(ki)], (H, O), jnp.float32)
        self.ba2 = (0.01 * jax.random.normal(keys[next(ki)], (O,), jnp.float32)
                    ).reshape(1, O)

    def __call__(self, x_nchw, n=1, eps_key=None):
        B = x_nchw.shape[0]
        Z, O = self.z_dim, self.out_dim
        if eps_key is None:                      # deterministic fallback
            eps_key = jax.random.PRNGKey(0)
        # Reference uses only rot_mat_enc[0] downstream -> sample 0 only.
        # TODO(synk): n>1 multi-sample latents are not returned.
        eps = jax.random.normal(eps_key, (B, Z), jnp.float32)

        # Flatten NCHW input channel-major: matches the CHW ordering the dense
        # conv matrices were built with (and PyTorch's post-conv .view).
        x_flat = x_nchw.reshape(B, -1).astype(jnp.float32)

        operands = [x_flat]
        for m, c in self.conv_mats:
            operands += [m, c]
        operands += [self.wh, self.bh, self.wa1, self.ba1,
                     self.wa2, self.ba2, eps]

        vmem = pl.BlockSpec(memory_space=pltpu.MemorySpace.VMEM)
        items, z = pl.pallas_call(
            functools.partial(_encoder_fused_kernel,
                              n_conv=self.n_enc_lay, z_dim=Z),
            out_shape=(jax.ShapeDtypeStruct((B, O), jnp.float32),
                       jax.ShapeDtypeStruct((B, Z), jnp.float32)),
            in_specs=[vmem] * len(operands),
            out_specs=(vmem, vmem),
        )(*operands)
        return items, z


# --------------------------------- main ------------------------------------ #

if __name__ == "__main__":
    config = dict(
        wigner_dim=3,
        latent_mode='normal',
        latent_space='normal',   # -> Nreparameterize + ActionNetRL branch
        mean_mode='normal',
        item_rep=4,
        rep_copies=2,
        dimension=2,             # 2-D convolutions
        n_enc_lay=3,
        img_shape=(1, 16, 16),   # (C, H, W)
        latent_dim=8,
    )

    key = jax.random.PRNGKey(0)
    k_x, k_params, k_eps = jax.random.split(key, 3)
    x = jax.random.normal(k_x, (2, 1, 16, 16), jnp.float32)  # NCHW, batch=2

    enc = Encoder(config, k_params)
    items, rot_mat_enc = enc(x, n=1, eps_key=k_eps)
    jax.block_until_ready((items, rot_mat_enc))

    assert items.shape == (2, config['item_rep'] * config['rep_copies'])
    assert rot_mat_enc.shape == (2, config['latent_dim'])

    # Pure-JAX reference of the identical math (sanity check of the fused kernel).
    def _ref_forward(xx, e, eps):
        h = xx.reshape(xx.shape[0], -1).astype(jnp.float32)
        for m, c in e.conv_mats:
            h = jnp.maximum(h @ m + c, 0.0)
        heads = h @ e.wh + e.bh
        mu, logvar = heads[:, :e.z_dim], heads[:, e.z_dim:]
        zz = mu + jnp.exp(0.5 * logvar) * eps
        hid = jnp.maximum(zz @ e.wa1 + e.ba1, 0.0)
        return hid @ e.wa2 + e.ba2, zz

    eps_ref = jax.random.normal(k_eps, (2, config['latent_dim']), jnp.float32)
    items_ref, z_ref = _ref_forward(x, enc, eps_ref)
    assert jnp.allclose(items, items_ref, atol=1e-2, rtol=1e-2)
    assert jnp.allclose(rot_mat_enc, z_ref, atol=1e-2, rtol=1e-2)

    print("KERNEL_OK")
</pallas_src>

<mosaic_0001>
module attributes {stable_mosaic.version = 11 : i64} {
  func.func @_encoder_fused_kernel(%arg0: memref<2x256xf32, #tpu.memory_space<vmem>>, %arg1: memref<256x128xf32, #tpu.memory_space<vmem>>, %arg2: memref<1x128xf32, #tpu.memory_space<vmem>>, %arg3: memref<128x64xf32, #tpu.memory_space<vmem>>, %arg4: memref<1x64xf32, #tpu.memory_space<vmem>>, %arg5: memref<64x16xf32, #tpu.memory_space<vmem>>, %arg6: memref<1x16xf32, #tpu.memory_space<vmem>>, %arg7: memref<16x16xf32, #tpu.memory_space<vmem>>, %arg8: memref<1x16xf32, #tpu.memory_space<vmem>>, %arg9: memref<8x16xf32, #tpu.memory_space<vmem>>, %arg10: memref<1x16xf32, #tpu.memory_space<vmem>>, %arg11: memref<16x8xf32, #tpu.memory_space<vmem>>, %arg12: memref<1x8xf32, #tpu.memory_space<vmem>>, %arg13: memref<2x8xf32, #tpu.memory_space<vmem>>, %arg14: memref<2x8xf32, #tpu.memory_space<vmem>>, %arg15: memref<2x8xf32, #tpu.memory_space<vmem>>) attributes {dimension_semantics = [], scalar_prefetch = 0 : i64, scratch_operands = 0 : i64, tpu.core_type = #tpu.core_type<tc>} {
    %c0 = arith.constant 0 : index
    %c0_0 = arith.constant 0 : index
    %0 = vector.load %arg0[%c0, %c0_0] : memref<2x256xf32, #tpu.memory_space<vmem>>, vector<2x256xf32>
    %c0_1 = arith.constant 0 : index
    %c0_2 = arith.constant 0 : index
    %1 = vector.load %arg1[%c0_1, %c0_2] : memref<256x128xf32, #tpu.memory_space<vmem>>, vector<256x128xf32>
    %cst = arith.constant dense<0.000000e+00> : vector<2x128xf32>
    %2 = tpu.matmul %0, %1, %cst {dimension_numbers = #tpu.dot_dimension_numbers<[1], [0], [0], [1], [0, 0, 1, 1], [], []>} : vector<2x256xf32>, vector<256x128xf32>, vector<2x128xf32> -> vector<2x128xf32>
    %c0_3 = arith.constant 0 : index
    %c0_4 = arith.constant 0 : index
    %3 = vector.load %arg2[%c0_3, %c0_4] : memref<1x128xf32, #tpu.memory_space<vmem>>, vector<1x128xf32>
    %4 = vector.broadcast %3 : vector<1x128xf32> to vector<2x128xf32>
    %5 = arith.addf %2, %4 : vector<2x128xf32>
    %cst_5 = arith.constant 0.000000e+00 : f32
    %6 = vector.broadcast %cst_5 : f32 to vector<2x128xf32>
    %7 = arith.maximumf %5, %6 : vector<2x128xf32>
    %c0_6 = arith.constant 0 : index
    %c0_7 = arith.constant 0 : index
    %8 = vector.load %arg3[%c0_6, %c0_7] : memref<128x64xf32, #tpu.memory_space<vmem>>, vector<128x64xf32>
    %cst_8 = arith.constant dense<0.000000e+00> : vector<2x64xf32>
    %9 = tpu.matmul %7, %8, %cst_8 {dimension_numbers = #tpu.dot_dimension_numbers<[1], [0], [0], [1], [0, 0, 1, 1], [], []>} : vector<2x128xf32>, vector<128x64xf32>, vector<2x64xf32> -> vector<2x64xf32>
    %c0_9 = arith.constant 0 : index
    %c0_10 = arith.constant 0 : index
    %10 = vector.load %arg4[%c0_9, %c0_10] : memref<1x64xf32, #tpu.memory_space<vmem>>, vector<1x64xf32>
    %11 = vector.broadcast %10 : vector<1x64xf32> to vector<2x64xf32>
    %12 = arith.addf %9, %11 : vector<2x64xf32>
    %cst_11 = arith.constant 0.000000e+00 : f32
    %13 = vector.broadcast %cst_11 : f32 to vector<2x64xf32>
    %14 = arith.maximumf %12, %13 : vector<2x64xf32>
    %c0_12 = arith.constant 0 : index
    %c0_13 = arith.constant 0 : index
    %15 = vector.load %arg5[%c0_12, %c0_13] : memref<64x16xf32, #tpu.memory_space<vmem>>, vector<64x16xf32>
    %cst_14 = arith.constant dense<0.000000e+00> : vector<2x16xf32>
    %16 = tpu.matmul %14, %15, %cst_14 {dimension_numbers = #tpu.dot_dimension_numbers<[1], [0], [0], [1], [0, 0, 1, 1], [], []>} : vector<2x64xf32>, vector<64x16xf32>, vector<2x16xf32> -> vector<2x16xf32>
    %c0_15 = arith.constant 0 : index
    %c0_16 = arith.constant 0 : index
    %17 = vector.load %arg6[%c0_15, %c0_16] : memref<1x16xf32, #tpu.memory_space<vmem>>, vector<1x16xf32>
    %18 = vector.broadcast %17 : vector<1x16xf32> to vector<2x16xf32>
    %19 = arith.addf %16, %18 : vector<2x16xf32>
    %cst_17 = arith.constant 0.000000e+00 : f32
    %20 = vector.broadcast %cst_17 : f32 to vector<2x16xf32>
    %21 = arith.maximumf %19, %20 : vector<2x16xf32>
    %c0_18 = arith.constant 0 : index
    %c0_19 = arith.constant 0 : index
    %22 = vector.load %arg7[%c0_18, %c0_19] : memref<16x16xf32, #tpu.memory_space<vmem>>, vector<16x16xf32>
    %cst_20 = arith.constant dense<0.000000e+00> : vector<2x16xf32>
    %23 = tpu.matmul %21, %22, %cst_20 {dimension_numbers = #tpu.dot_dimension_numbers<[1], [0], [0], [1], [0, 0, 1, 1], [], []>} : vector<2x16xf32>, vector<16x16xf32>, vector<2x16xf32> -> vector<2x16xf32>
    %c0_21 = arith.constant 0 : index
    %c0_22 = arith.constant 0 : index
    %24 = vector.load %arg8[%c0_21, %c0_22] : memref<1x16xf32, #tpu.memory_space<vmem>>, vector<1x16xf32>
    %25 = vector.broadcast %24 : vector<1x16xf32> to vector<2x16xf32>
    %26 = arith.addf %23, %25 : vector<2x16xf32>
    %27 = vector.extract_strided_slice %26 {offsets = [0, 0], sizes = [2, 8], strides = [1, 1]} : vector<2x16xf32> to vector<2x8xf32>
    %28 = vector.extract_strided_slice %26 {offsets = [0, 8], sizes = [2, 8], strides = [1, 1]} : vector<2x16xf32> to vector<2x8xf32>
    %cst_23 = arith.constant 5.000000e-01 : f32
    %29 = vector.broadcast %cst_23 : f32 to vector<2x8xf32>
    %30 = arith.mulf %29, %28 : vector<2x8xf32>
    %31 = math.exp %30 : vector<2x8xf32>
    %c0_24 = arith.constant 0 : index
    %c0_25 = arith.constant 0 : index
    %32 = vector.load %arg13[%c0_24, %c0_25] : memref<2x8xf32, #tpu.memory_space<vmem>>, vector<2x8xf32>
    %33 = arith.mulf %31, %32 : vector<2x8xf32>
    %34 = arith.addf %27, %33 : vector<2x8xf32>
    %c0_26 = arith.constant 0 : index
    %c0_27 = arith.constant 0 : index
    %35 = vector.load %arg9[%c0_26, %c0_27] : memref<8x16xf32, #tpu.memory_space<vmem>>, vector<8x16xf32>
    %cst_28 = arith.constant dense<0.000000e+00> : vector<2x16xf32>
    %36 = tpu.matmul %34, %35, %cst_28 {dimension_numbers = #tpu.dot_dimension_numbers<[1], [0], [0], [1], [0, 0, 1, 1], [], []>} : vector<2x8xf32>, vector<8x16xf32>, vector<2x16xf32> -> vector<2x16xf32>
    %c0_29 = arith.constant 0 : index
    %c0_30 = arith.constant 0 : index
    %37 = vector.load %arg10[%c0_29, %c0_30] : memref<1x16xf32, #tpu.memory_space<vmem>>, vector<1x16xf32>
    %38 = vector.broadcast %37 : vector<1x16xf32> to vector<2x16xf32>
    %39 = arith.addf %36, %38 : vector<2x16xf32>
    %cst_31 = arith.constant 0.000000e+00 : f32
    %40 = vector.broadcast %cst_31 : f32 to vector<2x16xf32>
    %41 = arith.maximumf %39, %40 : vector<2x16xf32>
    %c0_32 = arith.constant 0 : index
    %c0_33 = arith.constant 0 : index
    %42 = vector.load %arg11[%c0_32, %c0_33] : memref<16x8xf32, #tpu.memory_space<vmem>>, vector<16x8xf32>
    %cst_34 = arith.constant dense<0.000000e+00> : vector<2x8xf32>
    %43 = tpu.matmul %41, %42, %cst_34 {dimension_numbers = #tpu.dot_dimension_numbers<[1], [0], [0], [1], [0, 0, 1, 1], [], []>} : vector<2x16xf32>, vector<16x8xf32>, vector<2x8xf32> -> vector<2x8xf32>
    %c0_35 = arith.constant 0 : index
    %c0_36 = arith.constant 0 : index
    %44 = vector.load %arg12[%c0_35, %c0_36] : memref<1x8xf32, #tpu.memory_space<vmem>>, vector<1x8xf32>
    %45 = vector.broadcast %44 : vector<1x8xf32> to vector<2x8xf32>
    %46 = arith.addf %43, %45 : vector<2x8xf32>
    %c0_37 = arith.constant 0 : index
    %c0_38 = arith.constant 0 : index
    %47 = vector.load %arg14[%c0_37, %c0_38] : memref<2x8xf32, #tpu.memory_space<vmem>>, vector<2x8xf32>
    tpu.vector_store %arg14[%c0_37, %c0_38], %46 {strides = array<i32>} : memref<2x8xf32, #tpu.memory_space<vmem>>, vector<2x8xf32>,
    %c0_39 = arith.constant 0 : index
    %c0_40 = arith.constant 0 : index
    %48 = vector.load %arg15[%c0_39, %c0_40] : memref<2x8xf32, #tpu.memory_space<vmem>>, vector<2x8xf32>
    tpu.vector_store %arg15[%c0_39, %c0_40], %34 {strides = array<i32>} : memref<2x8xf32, #tpu.memory_space<vmem>>, vector<2x8xf32>,
    return
  }
}

</mosaic_0001>

<bundles_post_ra>
// kernel: tpu_custom_call.1
= control target key start
LH: loop header
LB: loop body
LE: loop exit
PB: predicated region body
PF: predicated region fallthrough
CT: control target
= control target key end

     0   :  { %21 = vsyncpa [#allocation3], 0  ;;  %s1276_s0 = inlined_call_operand.vmem [shape: f32[2,256], index: 0, kind: input, shape index: {}]   ;;  %s1277_s1 = inlined_call_operand.vmem [shape: f32[256,128], index: 1, kind: input, shape index: {}]   ;;  %s1278_s2 = inlined_call_operand.vmem [shape: f32[1,128], index: 2, kind: input, shape index: {}]   ;;  %s1279_s3 = inlined_call_operand.vmem [shape: f32[128,64], index: 3, kind: input, shape index: {}]   ;;  %s1280_s4 = inlined_call_operand.hbm [shape: f32[1,64], index: 4, kind: input, shape index: {}]   ;;  %s1281_s5 = inlined_call_operand.vmem [shape: f32[64,16], index: 5, kind: input, shape index: {}]   ;;  %s1282_s6 = inlined_call_operand.vmem [shape: f32[1,16], index: 6, kind: input, shape index: {}]   ;;  %s1283_s7 = inlined_call_operand.vmem [shape: f32[16,16], index: 7, kind: input, shape index: {}]   ;;  %s1284_s8 = inlined_call_operand.hbm [shape: f32[1,16], index: 8, kind: input, shape index: {}]   ;;  %s1285_s9 = inlined_call_operand.vmem [shape: f32[8,16], index: 9, kind: input, shape index: {}]   ;;  %s1286_s10 = inlined_call_operand.vmem [shape: f32[1,16], index: 10, kind: input, shape index: {}]   ;;  %s1287_s11 = inlined_call_operand.vmem [shape: f32[16,8], index: 11, kind: input, shape index: {}]   ;;  %s1288_s12 = inlined_call_operand.vmem [shape: f32[1,8], index: 12, kind: input, shape index: {}]   ;;  %s1289_s13 = inlined_call_operand.vmem [shape: f32[2,8], index: 13, kind: input, shape index: {}]   ;;  %s1290_s14 = inlined_call_operand.hbm [shape: f32[2,8], index: 14, kind: output, shape index: {0}]   ;;  %s1291_s15 = inlined_call_operand.hbm [shape: f32[2,8], index: 15, kind: output, shape index: {1}]  }
   0x1   :  { %22 = vsyncpa [#allocation6], 0 }
   0x2   :  { %23 = vsyncpa [#allocation4], 0 }
   0x3   :  { %24 = vsyncpa [#allocation9], 0  ;;  %s927_s18 = smov [#allocation2]   ;;  %s928_s20 = smov [#allocation5]  }
   0x4   :  { %s39_s19 = sshll.u32 %s927_s18, 4  ;;  %s55_s21 = sshll.u32 %s928_s20, 4  ;;  %s40_s19 = int_to_ptr.vmem [resolvable:$true] %s39_s19  ;;  %s56_s21 = int_to_ptr.vmem [resolvable:$true] %s55_s21 }
   0x5   :  { %s847_s22 = scalar_lea.vmem %s40_s19, 16  ;;  %s851_s23 = scalar_lea.vmem %s40_s19, 32 }
   0x6   :  { %p848_p0 = scmp.ne.s32.totalorder %s40_s19, %s847_s22  ;;  %p852_p1 = scmp.lt.s32.totalorder %s40_s19, %s40_s19 }
   0x7   :  { %p853_p2 = scmp.lt.s32.totalorder %s851_s23, %s847_s22 }
   0x9   :  { %p854_p3 = por %p853_p2, %p852_p1 }
   0xb   :  { %p855_p4 = pnand %p854_p3, %p848_p0 }
   0xd   :  { %858 = shalt.err (!%p855_p4)
}
   0xe   :  { %42 = dma.hbm_to_vmem [thread:$0]  %s1280_s4, 16, %s40_s19, [#allocation3]  }
   0xf   :  { %s867_s26 = scalar_lea.vmem %s56_s21, 16  ;;  %s871_s27 = scalar_lea.vmem %s56_s21, 32 }
  0x10   :  { %p868_p5 = scmp.ne.s32.totalorder %s56_s21, %s867_s26  ;;  %p872_p6 = scmp.lt.s32.totalorder %s56_s21, %s56_s21 }
  0x11   :  { %p873_p7 = scmp.lt.s32.totalorder %s871_s27, %s867_s26 }
  0x13   :  { %p874_p8 = por %p873_p7, %p872_p6 }
  0x15   :  { %p875_p9 = pnand %p874_p8, %p868_p5 }
  0x17   :  { %878 = shalt.err (!%p875_p9)
}
  0x18   :  { %58 = dma.hbm_to_vmem [thread:$0]  %s1284_s8, 16, %s56_s21, [#allocation6]  }
  0x19   :  { %919 = dma.done.wait [#allocation3], 16  }
  0x1a   :  { %920 = vsyncadd [#allocation3], 4294967280 }
  0x1b   :  { %921 = dma.done.wait [#allocation6], 16  }
  0x1c   :  { %922 = vsyncadd [#allocation6], 4294967280  ;;  %v929_v0 = vmov 0.0   ;;  %v107_v1 = vld [vmem:[%s1277_s1 + $0xf8] sm:$0xff]  ;;  %v106_v3 = vld [vmem:[%s1277_s1 + $0xf0] sm:$0xff]  ;;  %vm930_vm0 = vmmov 0  }
  0x1d   :  { %756 = vmatprep.subr.mxu1 %v929_v0  ;;  %v91_v2 = vld [vmem:[%s1277_s1 + $0x78] sm:$0xff]  ;;  %687 = vmatprep.subr.mxu0 %v107_v1  ;;  %v90_v4 = vld [vmem:[%s1277_s1 + $0x70] sm:$0xff]  ;;  %v105_v5 = vld [vmem:[%s1277_s1 + $0xe8] sm:$0xff]  ;;  %vm306_vm1 = vcmask 523264   ;;  %s931_s23 = smov 8   ;;  %vm390_vm2 = vcmask 130048  }
  0x1e   :  { %688 = vmatpush3.msra.mxu0 %v91_v2  ;;  %v89_v6 = vld [vmem:[%s1277_s1 + $0x68] sm:$0xff]  ;;  %v104_v7 = vld [vmem:[%s1277_s1 + $0xe0] sm:$0xff]  ;;  %v103_v9 = vld [vmem:[%s1277_s1 + $0xd8] sm:$0xff]  ;;  %788 = vmatprep.mubr.msk.f32.mxu1 %vm930_vm0, %v929_v0  ;;  %vm486_vm3 = vcmask 64512   ;;  %vm643_vm4 = vcmask 58368  }
  0x1f   :  { %689 = vmatprep.subr.mxu0 %v106_v3  ;;  %v88_v8 = vld [vmem:[%s1277_s1 + $0x60] sm:$0xff]  ;;  %v87_v10 = vld [vmem:[%s1277_s1 + $0x58] sm:$0xff]  ;;  %v102_v11 = vld [vmem:[%s1277_s1 + $0xd0] sm:$0xff] }
  0x20   :  { %690 = vmatpush3.msra.mxu0 %v90_v4  ;;  %v86_v12 = vld [vmem:[%s1277_s1 + $0x50] sm:$0xff]  ;;  %v101_v13 = vld [vmem:[%s1277_s1 + $0xc8] sm:$0xff]  ;;  %v1064_v14 = vld.sshfl [vmem:[%s1276_s0] sm:$0x33 pattern:$0x76325410] }
  0x21   :  { %691 = vmatprep.subr.mxu0 %v105_v5  ;;  %v85_v15 = vld [vmem:[%s1277_s1 + $0x48] sm:$0xff]  ;;  %v123_v16 = vcombine.high %v1064_v14, %v1064_v14  ;;  %v212_v17 = vld [vmem:[%s1279_s3 + $0x78] sm:$0xff]  ;;  %v100_v18 = vld [vmem:[%s1277_s1 + $0xc0] sm:$0xff] }
  0x22   :  { %692 = vmatpush3.msra.mxu0 %v89_v6  ;;  %757 = vmatpush3.msra.mxu1 %v212_v17  ;;  %v211_v19 = vld [vmem:[%s1279_s3 + $0x70] sm:$0xff]  ;;  %v84_v20 = vld [vmem:[%s1277_s1 + $0x40] sm:$0xff]  ;;  %v99_v21 = vld [vmem:[%s1277_s1 + $0xb8] sm:$0xff] }
  0x23   :  { %693 = vmatprep.subr.mxu0 %v104_v7  ;;  %190 = vmatprep.mubr.f32.mxu0 %v123_v16  ;;  %v210_v22 = vld [vmem:[%s1279_s3 + $0x68] sm:$0xff]  ;;  %v83_v23 = vld [vmem:[%s1277_s1 + $0x38] sm:$0xff]  ;;  %v98_v24 = vld [vmem:[%s1277_s1 + $0xb0] sm:$0xff] }
  0x24   :  { %694 = vmatpush3.msra.mxu0 %v88_v8  ;;  %758 = vmatprep.subr.mxu1 %v929_v0  ;;  %v209_v25 = vld [vmem:[%s1279_s3 + $0x60] sm:$0xff]  ;;  %v82_v26 = vld [vmem:[%s1277_s1 + $0x30] sm:$0xff]  ;;  %v97_v27 = vld [vmem:[%s1277_s1 + $0xa8] sm:$0xff] }
  0x25   :  { %695 = vmatprep.subr.mxu0 %v103_v9  ;;  %759 = vmatpush3.msra.mxu1 %v211_v19  ;;  %v208_v28 = vld [vmem:[%s1279_s3 + $0x58] sm:$0xff]  ;;  %v81_v29 = vld [vmem:[%s1277_s1 + $0x28] sm:$0xff]  ;;  %v96_v30 = vld [vmem:[%s1277_s1 + $0xa0] sm:$0xff] }
  0x26   :  { %696 = vmatpush3.msra.mxu0 %v87_v10  ;;  %760 = vmatprep.subr.mxu1 %v929_v0  ;;  %v207_v31 = vld [vmem:[%s1279_s3 + $0x50] sm:$0xff]  ;;  %v80_v32 = vld [vmem:[%s1277_s1 + $0x20] sm:$0xff]  ;;  %v95_v33 = vld [vmem:[%s1277_s1 + $0x98] sm:$0xff] }
  0x27   :  { %697 = vmatprep.subr.mxu0 %v102_v11  ;;  %761 = vmatpush3.msra.mxu1 %v210_v22  ;;  %v206_v34 = vld [vmem:[%s1279_s3 + $0x48] sm:$0xff]  ;;  %v79_v35 = vld [vmem:[%s1277_s1 + $0x18] sm:$0xff]  ;;  %v94_v36 = vld [vmem:[%s1277_s1 + $0x90] sm:$0xff] }
  0x28   :  { %698 = vmatpush3.msra.mxu0 %v86_v12  ;;  %762 = vmatprep.subr.mxu1 %v929_v0  ;;  %v205_v37 = vld [vmem:[%s1279_s3 + $0x40] sm:$0xff]  ;;  %v78_v38 = vld [vmem:[%s1277_s1 + $0x10] sm:$0xff]  ;;  %v93_v39 = vld [vmem:[%s1277_s1 + $0x88] sm:$0xff] }
  0x29   :  { %699 = vmatprep.subr.mxu0 %v101_v13  ;;  %763 = vmatpush3.msra.mxu1 %v209_v25  ;;  %v204_v40 = vld [vmem:[%s1279_s3 + $0x38] sm:$0xff]  ;;  %v77_v41 = vld [vmem:[%s1277_s1 + $0x8] sm:$0xff]  ;;  %v92_v42 = vld [vmem:[%s1277_s1 + $0x80] sm:$0xff] }
  0x2a   :  { %700 = vmatpush3.msra.mxu0 %v85_v15  ;;  %764 = vmatprep.subr.mxu1 %v929_v0  ;;  %v203_v43 = vld [vmem:[%s1279_s3 + $0x30] sm:$0xff]  ;;  %v76_v44 = vld [vmem:[%s1277_s1] sm:$0xff]  ;;  %v202_v45 = vld [vmem:[%s1279_s3 + $0x28] sm:$0xff]  ;;  %s933_s1 = smov [#allocation8]  }
  0x2b   :  { %701 = vmatprep.subr.mxu0 %v100_v18  ;;  %765 = vmatpush3.msra.mxu1 %v208_v28  ;;  %v201_v46 = vld [vmem:[%s1279_s3 + $0x20] sm:$0xff]  ;;  %v200_v47 = vld [vmem:[%s1279_s3 + $0x18] sm:$0xff]  ;;  %v199_v48 = vld [vmem:[%s1279_s3 + $0x10] sm:$0xff]  ;;  %s662_s0 = sshll.u32 %s933_s1, 4  ;;  %s663_s0 = int_to_ptr.vmem [resolvable:$true] %s662_s0 }
  0x2c   :  { %702 = vmatpush3.msra.mxu0 %v84_v20  ;;  %766 = vmatprep.subr.mxu1 %v929_v0  ;;  %v198_v49 = vld [vmem:[%s1279_s3 + $0x8] sm:$0xff]  ;;  %v197_v50 = vld [vmem:[%s1279_s3] sm:$0xff]  ;;  %v298_v51 = vld [vmem:[%s1281_s5 + $0x38] sm:$0xff]  ;;  %s879_s4 = scalar_lea.vmem %s663_s0, 32  ;;  %p884_p11 = scmp.lt.s32.totalorder %s663_s0, %s663_s0 }
  0x2d   :  { %703 = vmatprep.subr.mxu0 %v99_v21  ;;  %767 = vmatpush3.msra.mxu1 %v207_v31  ;;  %v297_v52 = vld [vmem:[%s1281_s5 + $0x30] sm:$0xff]  ;;  %v296_v53 = vld [vmem:[%s1281_s5 + $0x28] sm:$0xff]  ;;  %v295_v54 = vld [vmem:[%s1281_s5 + $0x20] sm:$0xff]  ;;  %p880_p10 = scmp.ne.s32.totalorder %s663_s0, %s879_s4  ;;  %p885_p12 = scmp.lt.s32.totalorder %s879_s4, %s879_s4 }
  0x2e   :  { %704 = vmatpush3.msra.mxu0 %v83_v23  ;;  %768 = vmatprep.subr.mxu1 %v929_v0  ;;  %v294_v55 = vld [vmem:[%s1281_s5 + $0x18] sm:$0xff]  ;;  %v676_v57 = vld [vmem:[%s1278_s2] ss:$0 sm:$0xff]  ;;  %v293_v62 = vld [vmem:[%s1281_s5 + $0x10] sm:$0xff] }
  0x2f   :  { %705 = vmatprep.subr.mxu0 %v98_v24  ;;  %769 = vmatpush3.msra.mxu1 %v206_v34  ;;  %v292_v63 = vld [vmem:[%s1281_s5 + $0x8] sm:$0xff]  ;;  %v291_v1 = vld [vmem:[%s1281_s5] sm:$0xff]  ;;  %p886_p13 = por %p885_p12, %p884_p11 }
  0x30   :  { %706 = vmatpush3.msra.mxu0 %v82_v26  ;;  %770 = vmatprep.subr.mxu1 %v929_v0  ;;  %v678_v2 = vld [vmem:[#allocation2] ss:$0 sm:$0xff]  ;;  %v382_v7 = vld [vmem:[%s1283_s7 + $0x8] sm:$0xff]  ;;  %v681_v16 = vld [vmem:[#allocation5] ss:$0 sm:$0xff] }
  0x31   :  { %707 = vmatprep.subr.mxu0 %v97_v27  ;;  %771 = vmatpush3.msra.mxu1 %v205_v37  ;;  %v381_v8 = vld [vmem:[%s1283_s7] sm:$0xff]  ;;  %v562_v27 = vld [vmem:[%s1287_s11 + $0x8] sm:$0xff]  ;;  %p887_p0 = pnand %p886_p13, %p880_p10 }
  0x32   :  { %708 = vmatpush3.msra.mxu0 %v81_v29  ;;  %772 = vmatprep.subr.mxu1 %v929_v0  ;;  %v467_v9 = vld [vmem:[%s1289_s13] sm:$0x3] }
  0x33   :  { %709 = vmatprep.subr.mxu0 %v96_v30  ;;  %773 = vmatpush3.msra.mxu1 %v204_v40  ;;  %v679_v10 = vld [vmem:[%s1282_s6] ss:$0 sm:$0xff]  ;;  %s932_s6 = smov 120  }
  0x34   :  { %710 = vmatpush3.msra.mxu0 %v80_v32  ;;  %774 = vmatprep.subr.mxu1 %v929_v0  ;;  %v478_v15 = vld [vmem:[%s1285_s9] sm:$0xff] }
  0x35   :  { %711 = vmatprep.subr.mxu0 %v95_v33  ;;  %775 = vmatpush3.msra.mxu1 %v203_v43  ;;  %v561_v28 = vld [vmem:[%s1287_s11] sm:$0xff] }
  0x36   :  { %712 = vmatpush3.msra.mxu0 %v79_v35  ;;  %776 = vmatprep.subr.mxu1 %v929_v0  ;;  %v683_v29 = vld [vmem:[%s1286_s10] ss:$0 sm:$0xff] }
  0x37   :  { %713 = vmatprep.subr.mxu0 %v94_v36  ;;  %777 = vmatpush3.msra.mxu1 %v202_v45 }
  0x38   :  { %714 = vmatpush3.msra.mxu0 %v78_v38  ;;  %778 = vmatprep.subr.mxu1 %v929_v0 }
  0x39   :  { %715 = vmatprep.subr.mxu0 %v93_v39  ;;  %779 = vmatpush3.msra.mxu1 %v201_v46 }
  0x3a   :  { %716 = vmatpush3.msra.mxu0 %v77_v41  ;;  %780 = vmatprep.subr.mxu1 %v929_v0 }
  0x3b   :  { %717 = vmatprep.subr.mxu0 %v92_v42  ;;  %781 = vmatpush3.msra.mxu1 %v200_v47 }
  0x3c   :  { %718 = vmatpush3.msra.mxu0 %v76_v44  ;;  %782 = vmatprep.subr.mxu1 %v929_v0 }
  0x3d   :  { %191 = vmatmul.mubr.f32.vlgmr.msra.gmra.mxu0 %v1064_v14  ;;  %791 = vmatprep.subr.mxu0 %v929_v0 }
  0x3e   :  { %783 = vmatpush3.msra.mxu1 %v199_v48  ;;  %807 = vmatprep.mubr.msk.f32.mxu0 %vm930_vm0, %v929_v0 }
  0x3f   :  { %784 = vmatprep.subr.mxu1 %v929_v0  ;;  %792 = vmatpush3.msra.mxu0 %v298_v51 }
  0x40   :  { %785 = vmatpush3.msra.mxu1 %v198_v49  ;;  %793 = vmatprep.subr.mxu0 %v929_v0 }
  0x41   :  { %786 = vmatprep.subr.mxu1 %v929_v0  ;;  %794 = vmatpush3.msra.mxu0 %v297_v52 }
  0x42   :  { %787 = vmatpush3.msra.mxu1 %v197_v50  ;;  %795 = vmatprep.subr.mxu0 %v929_v0 }
  0x43   :  { %810 = vmatprep.subr.mxu1 %v929_v0  ;;  %796 = vmatpush3.msra.mxu0 %v296_v53 }
  0x44   :  { %797 = vmatprep.subr.mxu0 %v929_v0  ;;  %469 = vrot.lane.b32.xlu0 %v467_v9, %s931_s23 }
  0x45   :  { %798 = vmatpush3.msra.mxu0 %v295_v54 }
  0x46   :  { %799 = vmatprep.subr.mxu0 %v929_v0 }
  0x47   :  { %800 = vmatpush3.msra.mxu0 %v294_v55 }
  0x48   :  { %801 = vmatprep.subr.mxu0 %v929_v0 }
  0x49   :  { %802 = vmatpush3.msra.mxu0 %v293_v62 }
  0x4a   :  { %803 = vmatprep.subr.mxu0 %v929_v0 }
  0x4b   :  { %804 = vmatpush3.msra.mxu0 %v292_v63 }
  0x4c   :  { %805 = vmatprep.subr.mxu0 %v929_v0 }
  0x4d   :  { %806 = vmatpush3.msra.mxu0 %v291_v1 }
  0xb6   :  { %v470_v22 = vpop.permute.xlu0 %469 }
  0xfd   :  { %v719_v56 = vpop.f32.mrf.mxu0 }
  0xff   :  { %v720_v58 = vpop.f32.mrf.mxu0 }
 0x100   :  { %v721_v59 = vadd.f32 %v720_v58, %v719_v56 }
 0x102   :  { %v193_v60 = vadd.f32 %v721_v59, %v676_v57 }
 0x104   :  { %v196_v61 = vmax.f32 %v193_v60, 0.0 }
 0x106   :  { %789 = vmatmul.mubr.f32.vlgmr.msra.gmra.mxu1 %v196_v61 }
 0x107   :  { %814 = vmatprep.mubr.msk.f32.mxu1 %vm930_vm0, %v929_v0  ;;  %811 = vmatpush3.msra.mxu1 %v382_v7 }
 0x108   :  { %812 = vmatprep.subr.mxu1 %v929_v0 }
 0x109   :  { %813 = vmatpush3.msra.mxu1 %v381_v8 }
 0x10a   :  { %817 = vmatprep.subr.mxu1 %v929_v0 }
 0x1c6   :  { %v286_v3 = vpop.f32.mrf.mxu1 }
 0x1c7   :  { %v287_v4 = vadd.f32 %v678_v2, %v286_v3 }
 0x1c8   :  { %v790_v5 = vpop.f32.mrf.mxu1 }
 0x1c9   :  { %v290_v6 = vmax.f32 %v287_v4, 0.0 }
 0x1cb   :  { %808 = vmatmul.mubr.msk.f32.vlgmr.msra.gmra.mxu0 %vm306_vm1, %v290_v6 }
 0x28b   :  { %v376_v11 = vpop.f32.mrf.mxu0 }
 0x28c   :  { %v377_v12 = vadd.f32 %v679_v10, %v376_v11 }
 0x28d   :  { %v809_v13 = vpop.f32.mrf.mxu0 }
 0x28e   :  { %v380_v14 = vmax.f32 %v377_v12, 0.0 }
 0x290   :  { %815 = vmatmul.mubr.msk.f32.vlgmr.msra.gmra.mxu1 %vm390_vm2, %v380_v14 }
 0x291   :  { %819 = vmatprep.mubr.msk.f32.mxu1 %vm930_vm0, %v929_v0  ;;  %818 = vmatpush3.msra.mxu1 %v478_v15 }
 0x292   :  { %822 = vmatprep.subr.mxu1 %v929_v0 }
 0x350   :  { %v460_v17 = vpop.f32.mrf.mxu1 }
 0x351   :  { %v461_v18 = vadd.f32 %v681_v16, %v460_v17 }
 0x352   :  { %v816_v19 = vpop.f32.mrf.mxu1 }
 0x353   :  { %v464_v20 = vmul.f32 0.5, %v461_v18 }
 0x355   :  { %v465_v21 = vmul.f32 1.442695, %v464_v20 }
 0x357   :  { %837 = vpow2.f32 %v465_v21 }
 0x364   :  { %v838_v23 = vpop.eup %837 }
 0x365   :  { %v472_v24 = vmul.f32 %v838_v23, %v470_v22 }
 0x367   :  { %474 = vrot.lane.b32.xlu0 %v472_v24, %s932_s6 }
 0x3d9   :  { %v475_v25 = vpop.permute.xlu0 %474 }
 0x3da   :  { %v477_v26 = vadd.f32 %v475_v25, %v461_v18 }
 0x3dc   :  { %820 = vmatmul.mubr.msk.f32.vlgmr.msra.gmra.mxu1 %vm486_vm3, %v477_v26  ;;  %645 = vst.msk [vmem:[#allocation8] sm:$0x3] %vm643_vm4, %v477_v26 }
 0x3dd   :  { %826 = vmatprep.mubr.msk.f32.mxu1 %vm930_vm0, %v929_v0  ;;  %823 = vmatpush3.msra.mxu1 %v562_v27 }
 0x3de   :  { %824 = vmatprep.subr.mxu1 %v929_v0 }
 0x3df   :  { %825 = vmatpush3.msra.mxu1 %v561_v28 }
 0x49c   :  { %v556_v30 = vpop.f32.mrf.mxu1 }
 0x49d   :  { %v557_v31 = vadd.f32 %v683_v29, %v556_v30 }
 0x49e   :  { %v821_v32 = vpop.f32.mrf.mxu1 }
 0x49f   :  { %v560_v33 = vmax.f32 %v557_v31, 0.0 }
 0x4a1   :  { %827 = vmatmul.mubr.msk.f32.vlgmr.msra.gmra.mxu1 %vm390_vm2, %v560_v33 }
 0x4a2   :  { %890 = shalt.err (!%p887_p0)
}
 0x4a3   :  { %665 = dma.vmem_to_hbm [thread:$0]  %s663_s0, 32, %s1291_s15, [#allocation9]   ;;  %v685_v0 = vld [vmem:[%s1288_s12] ss:$0 sm:$0xff] }
 0x4a4   :  { %s934_s17 = smov [#allocation7]  }
 0x4a5   :  { %s652_s2 = sshll.u32 %s934_s17, 4  ;;  %s653_s2 = int_to_ptr.vmem [resolvable:$true] %s652_s2 }
 0x4a6   :  { %s899_s18 = scalar_lea.vmem %s653_s2, 32  ;;  %p904_p2 = scmp.lt.s32.totalorder %s653_s2, %s653_s2 }
 0x4a7   :  { %p900_p1 = scmp.ne.s32.totalorder %s653_s2, %s899_s18  ;;  %p905_p3 = scmp.lt.s32.totalorder %s899_s18, %s899_s18 }
 0x4a9   :  { %p906_p4 = por %p905_p3, %p904_p2 }
 0x4ab   :  { %p907_p5 = pnand %p906_p4, %p900_p1 }
 0x561   :  { %v639_v34 = vpop.f32.mrf.mxu1 }
 0x562   :  { %v640_v35 = vadd.f32 %v685_v0, %v639_v34 }
 0x563   :  { %v828_v36 = vpop.f32.mrf.mxu1 }
 0x564   :  { %644 = vst.msk [vmem:[#allocation7] sm:$0x3] %vm643_vm4, %v640_v35 }
 0x565   :  { %910 = shalt.err (!%p907_p5)
}
 0x566   :  { %655 = dma.vmem_to_hbm [thread:$0]  %s653_s2, 32, %s1290_s14, [#allocation4]  }
 0x567   :  { %923 = dma.done.wait [#allocation4], 32  }
 0x568   :  { %924 = vsyncadd [#allocation4], 4294967264 }
 0x569   :  { %925 = dma.done.wait [#allocation9], 32  }
 0x56a   :  { %926 = vsyncadd [#allocation9], 4294967264 }
 0x56b   :  { %672 = vsyncpa [#allocation3], 1 }
 0x56c   :  { %673 = vsyncpa [#allocation6], 1 }
 0x56d   :  { %674 = vsyncpa [#allocation4], 1 }
 0x56e   :  { %675 = vsyncpa [#allocation9], 1 }

</bundles_post_ra>
